<compile_context>
chip_gen: v6e
topology: v6e:2x2x1
jax: 0.10.0
libtpu: 0.0.40
codegen_flags: <defaults>
</compile_context>

<pallas_src>
import functools
import math

import jax
import jax.numpy as jnp
from jax import lax
from jax.experimental import pallas as pl
from jax.experimental.pallas import tpu as pltpu

NEG_INF = -1.0e30  # large finite negative: avoids exp(-inf - -inf) NaN paths


# ----------------------------------------------------------------------------
# Tile picker: largest tile <= cap dividing n, preferring 128-multiples
# (lane / MXU friendly, v5e 128x128 systolic alignment), then 8-multiples
# (sublane).  n <= cap -> full dim (always a legal block shape).
# ----------------------------------------------------------------------------
def _pick_tile(n, cap):
    if n <= cap:
        return n
    for t in range(cap - cap % 128, 0, -128):
        if n % t == 0:
            return t
    for t in range(cap - cap % 8, 0, -8):
        if n % t == 0:
            return t
    return n


def _vmem_limit(working_set_bytes):
    """Scoped-VMEM request: 2x headroom over the estimated working set,
    clamped to [32 MiB, 48 MiB] (v7x physical VMEM is 64 MiB per core)."""
    return int(min(max(2 * working_set_bytes, 32 * 2**20), 48 * 2**20))


# ----------------------------------------------------------------------------
# Kernel 1: fused QKV projection.  Grid = (rows, cout_tiles), both "parallel".
# One x row tile (DMA'd once per row tile) feeds three MXU matmuls.
# ----------------------------------------------------------------------------
def _qkv_kernel(x_ref, wq_ref, wk_ref, wv_ref, bq_ref, bk_ref, bv_ref,
                q_ref, k_ref, v_ref):
    x = x_ref[...]
    # TODO(synk): add K (Cin) tiling with an f32 accumulator scratch +
    # pl.when init/finalize for very large n_embd; here Cin is one block.
    q_ref[...] = (jnp.dot(x, wq_ref[...], preferred_element_type=jnp.float32)
                  + bq_ref[...]).astype(q_ref.dtype)
    k_ref[...] = (jnp.dot(x, wk_ref[...], preferred_element_type=jnp.float32)
                  + bk_ref[...]).astype(k_ref.dtype)
    v_ref[...] = (jnp.dot(x, wv_ref[...], preferred_element_type=jnp.float32)
                  + bv_ref[...]).astype(v_ref.dtype)


def qkv_projection(x2d, wq, wk, wv, bq, bk, bv):
    """x2d: (N, C); w*: (C, C); b*: (1, C) -> three (N, C) arrays."""
    n, cin = x2d.shape
    cout = wq.shape[1]
    tm = _pick_tile(n, 512)      # 512-row tiles: ~85% of HBM roofline
    tn = _pick_tile(cout, 512)   # Cout tiling keeps large weights streaming
    itemsize = x2d.dtype.itemsize
    est = itemsize * (2 * tm * cin            # x tile, double-buffered
                      + 2 * 3 * (cin * tn + tn)   # weight + bias tiles
                      + 2 * 3 * tm * tn)          # three output tiles
    return pl.pallas_call(
        _qkv_kernel,
        out_shape=tuple(jax.ShapeDtypeStruct((n, cout), x2d.dtype)
                        for _ in range(3)),
        grid=(n // tm, cout // tn),
        in_specs=[
            pl.BlockSpec((tm, cin), lambda i, j: (i, 0)),
            pl.BlockSpec((cin, tn), lambda i, j: (0, j)),
            pl.BlockSpec((cin, tn), lambda i, j: (0, j)),
            pl.BlockSpec((cin, tn), lambda i, j: (0, j)),
            pl.BlockSpec((1, tn), lambda i, j: (0, j)),
            pl.BlockSpec((1, tn), lambda i, j: (0, j)),
            pl.BlockSpec((1, tn), lambda i, j: (0, j)),
        ],
        out_specs=tuple(pl.BlockSpec((tm, tn), lambda i, j: (i, j))
                        for _ in range(3)),
        compiler_params=pltpu.CompilerParams(
            dimension_semantics=("parallel", "parallel"),
            vmem_limit_bytes=_vmem_limit(est)),
    )(x2d, wq, wk, wv, bq, bk, bv)


# ----------------------------------------------------------------------------
# Kernel 2: flash-tiled causal attention + output projection.
# Grid = (B, q_tiles, kv_tiles); kv axis last, "arbitrary".
# ----------------------------------------------------------------------------
def _flash_attn_proj_kernel(q_ref, k_ref, v_ref, wp_ref, bp_ref, o_ref,
                            acc_ref, m_ref, l_ref, *, n_head):
    qi = pl.program_id(1)
    ki = pl.program_id(2)
    tq, c = q_ref.shape
    tkv = k_ref.shape[0]
    d = c // n_head

    @pl.when(ki == 0)
    def _init():
        m_ref[...] = jnp.full_like(m_ref, NEG_INF)
        l_ref[...] = jnp.zeros_like(l_ref)
        acc_ref[...] = jnp.zeros_like(acc_ref)

    def flash_update(masked):
        if masked:
            # Tile-local causal bias (valid: TQ == TKV and qi == ki).  Built
            # once per diagonal tile and shared by all heads; off-diagonal
            # tiles pay zero masking cost.
            row = lax.broadcasted_iota(jnp.int32, (tq, tkv), 0)
            col = lax.broadcasted_iota(jnp.int32, (tq, tkv), 1)
            bias = jnp.where(col <= row, 0.0, NEG_INF).astype(jnp.float32)
        # Static Python loop over heads: every slice is a static, lane-dense
        # column range of the (tile, C) slabs -> no head transposes and no
        # dynamic-lane lowering.  (Equivalent to fori_loop(unroll=True) with
        # constant offsets; most robust for small n_head.)
        for h in range(n_head):
            c0, c1 = h * d, (h + 1) * d
            q_h = q_ref[:, c0:c1]                           # (TQ, D)
            k_h = k_ref[:, c0:c1]                           # (TKV, D)
            # scores: contract D, no materialized k^T; 1/sqrt(D) is already
            # folded into the query projection weights.
            s = lax.dot_general(q_h, k_h, (((1,), (1,)), ((), ())),
                                preferred_element_type=jnp.float32)
            if masked:
                s = s + bias
            m_old = m_ref[:, h:h + 1]
            l_old = l_ref[:, h:h + 1]
            m_new = jnp.maximum(m_old, jnp.max(s, axis=-1, keepdims=True))
            alpha = jnp.exp(m_old - m_new)                  # (TQ, 1)
            p = jnp.exp(s - m_new)                          # (TQ, TKV) f32
            m_ref[:, h:h + 1] = m_new
            l_ref[:, h:h + 1] = alpha * l_old + jnp.sum(p, axis=-1,
                                                        keepdims=True)
            pv = jnp.dot(p.astype(v_ref.dtype), v_ref[:, c0:c1],
                         preferred_element_type=jnp.float32)
            acc_ref[:, c0:c1] = alpha * acc_ref[:, c0:c1] + pv

    # Fully-visible kv tiles (strictly below the diagonal): no mask work.
    @pl.when(ki < qi)
    def _full_block():
        flash_update(masked=False)

    # Diagonal tile: masked update, then finalize.  It is the last useful kv
    # tile for this q tile (ki > qi tiles are skipped entirely; their k/v
    # index maps clamp to the diagonal so no extra DMA is issued either).
    @pl.when(ki == qi)
    def _diag_and_finalize():
        flash_update(masked=True)
        for h in range(n_head):
            c0, c1 = h * d, (h + 1) * d
            inv = pl.reciprocal(l_ref[:, h:h + 1], approx=False)  # exact
            acc_ref[:, c0:c1] = acc_ref[:, c0:c1] * inv
        y = acc_ref[...].astype(wp_ref.dtype)               # lane-dense (TQ, C)
        out = jnp.dot(y, wp_ref[...], preferred_element_type=jnp.float32)
        o_ref[...] = (out + bp_ref[...]).astype(o_ref.dtype)


def flash_attention_proj(q, k, v, wp, bp, n_head):
    """q, k, v: (B, T, C); wp: (C, C); bp: (1, C) -> (B, T, C)."""
    b, t, c = q.shape
    tile = _pick_tile(t, 256)            # TQ == TKV, 128/256-aligned if possible
    n_tiles = t // tile
    itemsize = q.dtype.itemsize
    est = (2 * 4 * tile * c * itemsize          # q, k, v, out tiles (dbl-buf)
           + 2 * (c * c + c) * itemsize         # wp, bp (VMEM-resident)
           + 4 * (tile * c + 2 * tile * n_head) # f32 scratch: acc, m, l
           + 4 * 3 * tile * tile)               # transient s / p / bias
    kernel = functools.partial(_flash_attn_proj_kernel, n_head=n_head)
    # TODO(synk): sweep pipeline_mode=pl.Buffered(3) on the k/v specs if xprof
    # shows exposed DMA for small head dims (costs extra VMEM on v7x).
    return pl.pallas_call(
        kernel,
        out_shape=jax.ShapeDtypeStruct((b, t, c), q.dtype),
        grid=(b, n_tiles, n_tiles),
        in_specs=[
            pl.BlockSpec((None, tile, c), lambda bi, qi, ki: (bi, qi, 0)),
            pl.BlockSpec((None, tile, c),
                         lambda bi, qi, ki: (bi, jnp.minimum(ki, qi), 0)),
            pl.BlockSpec((None, tile, c),
                         lambda bi, qi, ki: (bi, jnp.minimum(ki, qi), 0)),
            pl.BlockSpec((c, c), lambda bi, qi, ki: (0, 0)),
            pl.BlockSpec((1, c), lambda bi, qi, ki: (0, 0)),
        ],
        out_specs=pl.BlockSpec((None, tile, c), lambda bi, qi, ki: (bi, qi, 0)),
        scratch_shapes=[
            pltpu.VMEM((tile, c), jnp.float32),        # PV accumulator slab
            pltpu.VMEM((tile, n_head), jnp.float32),   # running max m
            pltpu.VMEM((tile, n_head), jnp.float32),   # running sum l
        ],
        compiler_params=pltpu.CompilerParams(
            dimension_semantics=("parallel", "parallel", "arbitrary"),
            vmem_limit_bytes=_vmem_limit(est)),
    )(q, k, v, wp, bp)


# ----------------------------------------------------------------------------
# Parameter prep (once, at load time) + full module forward.
# ----------------------------------------------------------------------------
def prepare_params(params, n_head):
    """One-time prep: fold the 1/sqrt(D) attention scale into wq/bq so the
    kernels never multiply q by the scale.  Call once, not per forward."""
    c = params["wq"].shape[0]
    scale = 1.0 / math.sqrt(c // n_head)
    p = dict(params)
    p["wq"] = params["wq"] * scale
    p["bq"] = params["bq"] * scale
    return p


def causal_self_attention(x, prepped_params, n_head):
    """Forward of CausalSelfAttention (eval mode: dropouts are identity)."""
    b, t, c = x.shape
    q, k, v = qkv_projection(
        x.reshape(b * t, c),
        prepped_params["wq"], prepped_params["wk"], prepped_params["wv"],
        prepped_params["bq"], prepped_params["bk"], prepped_params["bv"])
    q = q.reshape(b, t, c)
    k = k.reshape(b, t, c)
    v = v.reshape(b, t, c)
    return flash_attention_proj(q, k, v, prepped_params["wp"],
                                prepped_params["bp"], n_head)


# Pure-JAX reference (uses the original, unscaled parameters).
def reference(x, params, n_head):
    b, t, c = x.shape
    d = c // n_head
    k = x @ params["wk"] + params["bk"]
    q = x @ params["wq"] + params["bq"]
    v = x @ params["wv"] + params["bv"]
    split = lambda z: z.reshape(b, t, n_head, d).transpose(0, 2, 1, 3)
    qh, kh, vh = split(q), split(k), split(v)
    att = (qh @ kh.transpose(0, 1, 3, 2)) * (1.0 / math.sqrt(d))
    mask = jnp.tril(jnp.ones((t, t), dtype=bool))
    att = jnp.where(mask[None, None], att, -jnp.inf)
    att = jax.nn.softmax(att, axis=-1)
    y = att @ vh
    y = y.transpose(0, 2, 1, 3).reshape(b, t, c)
    return y @ params["wp"] + params["bp"]


if __name__ == "__main__":
    def run_case(b, t, c, h, seed):
        key = jax.random.PRNGKey(seed)
        ks = jax.random.split(key, 9)
        bound = 1.0 / math.sqrt(c)  # nn.Linear-style init scale
        params = {
            "wk": jax.random.uniform(ks[0], (c, c), jnp.float32, -bound, bound),
            "bk": jax.random.uniform(ks[1], (1, c), jnp.float32, -bound, bound),
            "wq": jax.random.uniform(ks[2], (c, c), jnp.float32, -bound, bound),
            "bq": jax.random.uniform(ks[3], (1, c), jnp.float32, -bound, bound),
            "wv": jax.random.uniform(ks[4], (c, c), jnp.float32, -bound, bound),
            "bv": jax.random.uniform(ks[5], (1, c), jnp.float32, -bound, bound),
            "wp": jax.random.uniform(ks[6], (c, c), jnp.float32, -bound, bound),
            "bp": jax.random.uniform(ks[7], (1, c), jnp.float32, -bound, bound),
        }
        x = jax.random.normal(ks[8], (b, t, c), jnp.float32)

        prepped = prepare_params(params, h)          # once, at "load time"
        out = jax.block_until_ready(causal_self_attention(x, prepped, h))
        ref = jax.block_until_ready(reference(x, params, h))

        assert out.shape == (b, t, c)
        # Tolerance covers default-precision MXU/XLA f32 matmul differences
        # between kernel and reference; the softmax reciprocal is exact now.
        err = jnp.max(jnp.abs(out - ref))
        assert jnp.allclose(out, ref, atol=5e-3, rtol=5e-3), (
            f"mismatch vs reference at B={b},T={t},C={c},H={h}: max err {err}")

    # Small shape implied by the module config (block_size >= T, C % H == 0).
    run_case(2, 8, 32, 4, 0)
    # Larger sequence: exercises the multi-tile flash path (2x2 q/kv tiles,
    # causal block skipping, online softmax across kv tiles).
    run_case(1, 512, 32, 4, 1)

    print("KERNEL_OK")
</pallas_src>

<mosaic_0001>
module attributes {stable_mosaic.version = 11 : i64} {
  func.func @_qkv_kernel(%arg0: i32, %arg1: i32, %arg2: memref<16x32xf32, #tpu.memory_space<vmem>>, %arg3: memref<32x32xf32, #tpu.memory_space<vmem>>, %arg4: memref<32x32xf32, #tpu.memory_space<vmem>>, %arg5: memref<32x32xf32, #tpu.memory_space<vmem>>, %arg6: memref<1x32xf32, #tpu.memory_space<vmem>>, %arg7: memref<1x32xf32, #tpu.memory_space<vmem>>, %arg8: memref<1x32xf32, #tpu.memory_space<vmem>>, %arg9: memref<16x32xf32, #tpu.memory_space<vmem>>, %arg10: memref<16x32xf32, #tpu.memory_space<vmem>>, %arg11: memref<16x32xf32, #tpu.memory_space<vmem>>) attributes {dimension_semantics = [#tpu.dimension_semantics<parallel>, #tpu.dimension_semantics<parallel>], iteration_bounds = array<i64: 1, 1>, scalar_prefetch = 0 : i64, scratch_operands = 0 : i64, tpu.core_type = #tpu.core_type<tc>, window_params = [{transform_indices = @transform_0, window_bounds = array<i64: 16, 32>}, {transform_indices = @transform_1, window_bounds = array<i64: 32, 32>}, {transform_indices = @transform_2, window_bounds = array<i64: 32, 32>}, {transform_indices = @transform_3, window_bounds = array<i64: 32, 32>}, {transform_indices = @transform_4, window_bounds = array<i64: 1, 32>}, {transform_indices = @transform_5, window_bounds = array<i64: 1, 32>}, {transform_indices = @transform_6, window_bounds = array<i64: 1, 32>}, {transform_indices = @transform_7, window_bounds = array<i64: 16, 32>}, {transform_indices = @transform_8, window_bounds = array<i64: 16, 32>}, {transform_indices = @transform_9, window_bounds = array<i64: 16, 32>}]} {
    %c0 = arith.constant 0 : index
    %c0_0 = arith.constant 0 : index
    %0 = vector.load %arg2[%c0, %c0_0] : memref<16x32xf32, #tpu.memory_space<vmem>>, vector<16x32xf32>
    %c0_1 = arith.constant 0 : index
    %c0_2 = arith.constant 0 : index
    %1 = vector.load %arg3[%c0_1, %c0_2] : memref<32x32xf32, #tpu.memory_space<vmem>>, vector<32x32xf32>
    %cst = arith.constant dense<0.000000e+00> : vector<16x32xf32>
    %2 = tpu.matmul %0, %1, %cst {dimension_numbers = #tpu.dot_dimension_numbers<[1], [0], [0], [1], [0, 0, 1, 1], [], []>} : vector<16x32xf32>, vector<32x32xf32>, vector<16x32xf32> -> vector<16x32xf32>
    %c0_3 = arith.constant 0 : index
    %c0_4 = arith.constant 0 : index
    %3 = vector.load %arg6[%c0_3, %c0_4] : memref<1x32xf32, #tpu.memory_space<vmem>>, vector<1x32xf32>
    %4 = vector.broadcast %3 : vector<1x32xf32> to vector<16x32xf32>
    %5 = arith.addf %2, %4 : vector<16x32xf32>
    %c0_5 = arith.constant 0 : index
    %c0_6 = arith.constant 0 : index
    %6 = vector.load %arg9[%c0_5, %c0_6] : memref<16x32xf32, #tpu.memory_space<vmem>>, vector<16x32xf32>
    tpu.vector_store %arg9[%c0_5, %c0_6], %5 {strides = array<i32>} : memref<16x32xf32, #tpu.memory_space<vmem>>, vector<16x32xf32>,
    %c0_7 = arith.constant 0 : index
    %c0_8 = arith.constant 0 : index
    %7 = vector.load %arg4[%c0_7, %c0_8] : memref<32x32xf32, #tpu.memory_space<vmem>>, vector<32x32xf32>
    %cst_9 = arith.constant dense<0.000000e+00> : vector<16x32xf32>
    %8 = tpu.matmul %0, %7, %cst_9 {dimension_numbers = #tpu.dot_dimension_numbers<[1], [0], [0], [1], [0, 0, 1, 1], [], []>} : vector<16x32xf32>, vector<32x32xf32>, vector<16x32xf32> -> vector<16x32xf32>
    %c0_10 = arith.constant 0 : index
    %c0_11 = arith.constant 0 : index
    %9 = vector.load %arg7[%c0_10, %c0_11] : memref<1x32xf32, #tpu.memory_space<vmem>>, vector<1x32xf32>
    %10 = vector.broadcast %9 : vector<1x32xf32> to vector<16x32xf32>
    %11 = arith.addf %8, %10 : vector<16x32xf32>
    %c0_12 = arith.constant 0 : index
    %c0_13 = arith.constant 0 : index
    %12 = vector.load %arg10[%c0_12, %c0_13] : memref<16x32xf32, #tpu.memory_space<vmem>>, vector<16x32xf32>
    tpu.vector_store %arg10[%c0_12, %c0_13], %11 {strides = array<i32>} : memref<16x32xf32, #tpu.memory_space<vmem>>, vector<16x32xf32>,
    %c0_14 = arith.constant 0 : index
    %c0_15 = arith.constant 0 : index
    %13 = vector.load %arg5[%c0_14, %c0_15] : memref<32x32xf32, #tpu.memory_space<vmem>>, vector<32x32xf32>
    %cst_16 = arith.constant dense<0.000000e+00> : vector<16x32xf32>
    %14 = tpu.matmul %0, %13, %cst_16 {dimension_numbers = #tpu.dot_dimension_numbers<[1], [0], [0], [1], [0, 0, 1, 1], [], []>} : vector<16x32xf32>, vector<32x32xf32>, vector<16x32xf32> -> vector<16x32xf32>
    %c0_17 = arith.constant 0 : index
    %c0_18 = arith.constant 0 : index
    %15 = vector.load %arg8[%c0_17, %c0_18] : memref<1x32xf32, #tpu.memory_space<vmem>>, vector<1x32xf32>
    %16 = vector.broadcast %15 : vector<1x32xf32> to vector<16x32xf32>
    %17 = arith.addf %14, %16 : vector<16x32xf32>
    %c0_19 = arith.constant 0 : index
    %c0_20 = arith.constant 0 : index
    %18 = vector.load %arg11[%c0_19, %c0_20] : memref<16x32xf32, #tpu.memory_space<vmem>>, vector<16x32xf32>
    tpu.vector_store %arg11[%c0_19, %c0_20], %17 {strides = array<i32>} : memref<16x32xf32, #tpu.memory_space<vmem>>, vector<16x32xf32>,
    return
  }
  func.func @transform_0(%arg0: i32, %arg1: i32) -> (i32, i32) {
    %c0_i32 = arith.constant 0 : i32
    %c0_i32_0 = arith.constant 0 : i32
    return %arg0, %c0_i32 : i32, i32
  }
  func.func @transform_1(%arg0: i32, %arg1: i32) -> (i32, i32) {
    %c0_i32 = arith.constant 0 : i32
    %c0_i32_0 = arith.constant 0 : i32
    return %c0_i32, %arg1 : i32, i32
  }
  func.func @transform_2(%arg0: i32, %arg1: i32) -> (i32, i32) {
    %c0_i32 = arith.constant 0 : i32
    %c0_i32_0 = arith.constant 0 : i32
    return %c0_i32, %arg1 : i32, i32
  }
  func.func @transform_3(%arg0: i32, %arg1: i32) -> (i32, i32) {
    %c0_i32 = arith.constant 0 : i32
    %c0_i32_0 = arith.constant 0 : i32
    return %c0_i32, %arg1 : i32, i32
  }
  func.func @transform_4(%arg0: i32, %arg1: i32) -> (i32, i32) {
    %c0_i32 = arith.constant 0 : i32
    %c0_i32_0 = arith.constant 0 : i32
    return %c0_i32, %arg1 : i32, i32
  }
  func.func @transform_5(%arg0: i32, %arg1: i32) -> (i32, i32) {
    %c0_i32 = arith.constant 0 : i32
    %c0_i32_0 = arith.constant 0 : i32
    return %c0_i32, %arg1 : i32, i32
  }
  func.func @transform_6(%arg0: i32, %arg1: i32) -> (i32, i32) {
    %c0_i32 = arith.constant 0 : i32
    %c0_i32_0 = arith.constant 0 : i32
    return %c0_i32, %arg1 : i32, i32
  }
  func.func @transform_7(%arg0: i32, %arg1: i32) -> (i32, i32) {
    %c0_i32 = arith.constant 0 : i32
    return %arg0, %arg1 : i32, i32
  }
  func.func @transform_8(%arg0: i32, %arg1: i32) -> (i32, i32) {
    %c0_i32 = arith.constant 0 : i32
    return %arg0, %arg1 : i32, i32
  }
  func.func @transform_9(%arg0: i32, %arg1: i32) -> (i32, i32) {
    %c0_i32 = arith.constant 0 : i32
    return %arg0, %arg1 : i32, i32
  }
}

</mosaic_0001>

<bundles_post_ra>
// kernel: tpu_custom_call.1
= control target key start
LH: loop header
LB: loop body
LE: loop exit
PB: predicated region body
PF: predicated region fallthrough
CT: control target
= control target key end

     0   :  { %15 = vsyncpa [#allocation3], 0  ;;  %s750_s0 = inlined_call_operand.hbm [shape: f32[16,32], index: 0, kind: input, shape index: {}]   ;;  %s751_s1 = inlined_call_operand.hbm [shape: f32[32,32], index: 1, kind: input, shape index: {}]   ;;  %s752_s2 = inlined_call_operand.hbm [shape: f32[32,32], index: 2, kind: input, shape index: {}]   ;;  %s753_s3 = inlined_call_operand.hbm [shape: f32[32,32], index: 3, kind: input, shape index: {}]   ;;  %s754_s4 = inlined_call_operand.vmem [shape: f32[1,32], index: 4, kind: input, shape index: {}]   ;;  %s755_s5 = inlined_call_operand.vmem [shape: f32[1,32], index: 5, kind: input, shape index: {}]   ;;  %s756_s6 = inlined_call_operand.vmem [shape: f32[1,32], index: 6, kind: input, shape index: {}]   ;;  %s757_s7 = inlined_call_operand.hbm [shape: f32[16,32], index: 7, kind: output, shape index: {0}]   ;;  %s758_s8 = inlined_call_operand.hbm [shape: f32[16,32], index: 8, kind: output, shape index: {1}]   ;;  %s759_s9 = inlined_call_operand.hbm [shape: f32[16,32], index: 9, kind: output, shape index: {2}]  }
   0x1   :  { %16 = vsyncpa [#allocation6], 0 }
   0x2   :  { %17 = vsyncpa [#allocation9], 0 }
   0x3   :  { %18 = vsyncpa [#allocation4], 0 }
   0x4   :  { %19 = vsyncpa [#allocation12], 0  ;;  %s628_s30 = smov [#allocation5]   ;;  %s629_s11 = smov [#allocation2]  }
   0x5   :  { %s37_s10 = sshll.u32 %s628_s30, 4  ;;  %s25_s12 = sshll.u32 %s629_s11, 4  ;;  %s38_s10 = int_to_ptr.vmem [resolvable:$true] %s37_s10  ;;  %s26_s12 = int_to_ptr.vmem [resolvable:$true] %s25_s12 }
   0x6   :  { %s486_s13 = scalar_lea.vmem %s38_s10, 512  ;;  %p491_p1 = scmp.lt.s32.totalorder %s38_s10, %s38_s10 }
   0x7   :  { %p487_p0 = scmp.ne.s32.totalorder %s38_s10, %s486_s13  ;;  %p492_p2 = scmp.lt.s32.totalorder %s486_s13, %s486_s13 }
   0x9   :  { %p493_p3 = por %p492_p2, %p491_p1 }
   0xb   :  { %p494_p4 = pnand %p493_p3, %p487_p0 }
   0xd   :  { %497 = shalt.err (!%p494_p4)
}
   0xe   :  { %s630_s14 = smov 128   ;;  %s631_s15 = smov 8  }
   0xf   :  { %43 = dma.hbm_to_vmem [thread:$0]  %s751_s1, 512, %s38_s10, [#allocation6], %s630_s14, %s630_s14, %s631_s15  }
  0x10   :  { %s506_s18 = scalar_lea.vmem %s26_s12, 256  ;;  %p511_p6 = scmp.lt.s32.totalorder %s26_s12, %s26_s12 }
  0x11   :  { %p507_p5 = scmp.ne.s32.totalorder %s26_s12, %s506_s18  ;;  %p512_p7 = scmp.lt.s32.totalorder %s506_s18, %s506_s18 }
  0x13   :  { %p513_p8 = por %p512_p7, %p511_p6 }
  0x15   :  { %p514_p9 = pnand %p513_p8, %p507_p5 }
  0x17   :  { %517 = shalt.err (!%p514_p9)
}
  0x18   :  { %31 = dma.hbm_to_vmem [thread:$0]  %s750_s0, 256, %s26_s12, [#allocation3], %s630_s14, %s630_s14, %s631_s15  }
  0x19   :  { %s632_s21 = smov [#allocation7]   ;;  %s633_s23 = smov [#allocation8]  }
  0x1a   :  { %s49_s22 = sshll.u32 %s632_s21, 4  ;;  %s61_s24 = sshll.u32 %s633_s23, 4  ;;  %s50_s22 = int_to_ptr.vmem [resolvable:$true] %s49_s22  ;;  %s62_s24 = int_to_ptr.vmem [resolvable:$true] %s61_s24 }
  0x1b   :  { %s526_s1 = scalar_lea.vmem %s50_s22, 512  ;;  %p531_p11 = scmp.lt.s32.totalorder %s50_s22, %s50_s22 }
  0x1c   :  { %p527_p10 = scmp.ne.s32.totalorder %s50_s22, %s526_s1  ;;  %p532_p12 = scmp.lt.s32.totalorder %s526_s1, %s526_s1 }
  0x1e   :  { %p533_p13 = por %p532_p12, %p531_p11 }
  0x20   :  { %p534_p0 = pnand %p533_p13, %p527_p10 }
  0x22   :  { %537 = shalt.err (!%p534_p0)
}
  0x23   :  { %55 = dma.hbm_to_vmem [thread:$0]  %s752_s2, 512, %s50_s22, [#allocation6], %s630_s14, %s630_s14, %s631_s15  }
  0x24   :  { %s546_s0 = scalar_lea.vmem %s62_s24, 512  ;;  %p551_p2 = scmp.lt.s32.totalorder %s62_s24, %s62_s24 }
  0x25   :  { %p547_p1 = scmp.ne.s32.totalorder %s62_s24, %s546_s0  ;;  %p552_p3 = scmp.lt.s32.totalorder %s546_s0, %s546_s0 }
  0x27   :  { %p553_p4 = por %p552_p3, %p551_p2 }
  0x29   :  { %p554_p5 = pnand %p553_p4, %p547_p1 }
  0x2b   :  { %557 = shalt.err (!%p554_p5)
}
  0x2c   :  { %67 = dma.hbm_to_vmem [thread:$0]  %s753_s3, 512, %s62_s24, [#allocation9], %s630_s14, %s630_s14, %s631_s15  }
  0x2d   :  { %618 = dma.done.wait [#allocation3], 256  }
  0x2e   :  { %619 = vsyncadd [#allocation3], 4294967040 }
  0x2f   :  { %620 = dma.done.wait [#allocation6], 1024  }
  0x30   :  { %621 = vsyncadd [#allocation6], 4294966272 }
  0x31   :  { %622 = dma.done.wait [#allocation9], 512  }
  0x32   :  { %623 = vsyncadd [#allocation9], 4294966784  ;;  %v91_v0 = vld [vmem:[#allocation5 + $0x18] sm:$0xff]  ;;  %v90_v1 = vld [vmem:[#allocation5 + $0x10] sm:$0xff]  ;;  %vm99_vm0 = vcmask 261120   ;;  %s634_s29 = smov [#allocation10]  }
  0x33   :  { %436 = vmatprep.subr.mxu0 %v91_v0  ;;  %v186_v2 = vld [vmem:[#allocation7 + $0x18] sm:$0xff]  ;;  %v86_v3 = vld [vmem:[#allocation2] sm:$0xff]  ;;  %v89_v4 = vld [vmem:[#allocation5 + $0x8] sm:$0xff]  ;;  %s364_s30 = sshll.u32 %s634_s29, 4  ;;  %s635_s12 = smov [#allocation11]   ;;  %s365_s30 = int_to_ptr.vmem [resolvable:$true] %s364_s30 }
  0x34   :  { %437 = vmatpush3.msra.mxu0 %v91_v0  ;;  %447 = vmatprep.subr.mxu1 %v186_v2  ;;  %v185_v5 = vld [vmem:[#allocation7 + $0x10] sm:$0xff]  ;;  %v88_v6 = vld [vmem:[#allocation5] sm:$0xff]  ;;  %v184_v7 = vld [vmem:[#allocation7 + $0x8] sm:$0xff]  ;;  %s376_s13 = sshll.u32 %s635_s12, 4  ;;  %s558_s17 = scalar_lea.vmem %s365_s30, 256  ;;  %s377_s13 = int_to_ptr.vmem [resolvable:$true] %s376_s13 }
  0x35   :  { %438 = vmatprep.subr.mxu0 %v90_v1  ;;  %448 = vmatpush3.msra.mxu1 %v186_v2  ;;  %v87_v8 = vld [vmem:[#allocation2 + $0x8] sm:$0xff]  ;;  %v183_v10 = vld [vmem:[#allocation7] sm:$0xff]  ;;  %v273_v11 = vld [vmem:[#allocation8 + $0x10] sm:$0xff]  ;;  %p559_p6 = scmp.ne.s32.totalorder %s365_s30, %s558_s17  ;;  %p563_p7 = scmp.lt.s32.totalorder %s365_s30, %s365_s30 }
  0x36   :  { %439 = vmatpush3.msra.mxu0 %v90_v1  ;;  %444 = vmatprep.mubr.msk.f32.mxu0 %vm99_vm0, %v86_v3  ;;  %v274_v9 = vld [vmem:[#allocation8 + $0x18] sm:$0xff]  ;;  %v272_v12 = vld [vmem:[#allocation8 + $0x8] sm:$0xff]  ;;  %v271_v13 = vld [vmem:[#allocation8] sm:$0xff]  ;;  %p564_p8 = scmp.lt.s32.totalorder %s558_s17, %s558_s17 }
  0x37   :  { %440 = vmatprep.subr.mxu0 %v89_v4  ;;  %449 = vmatprep.subr.mxu1 %v185_v5  ;;  %v409_v14 = vld [vmem:[%s754_s4] ss:$0 sm:$0xff] }
  0x38   :  { %441 = vmatpush3.msra.mxu0 %v89_v4  ;;  %450 = vmatpush3.msra.mxu1 %v185_v5  ;;  %v412_v18 = vld [vmem:[%s755_s5] ss:$0 sm:$0xff]  ;;  %p565_p9 = por %p564_p8, %p563_p7 }
  0x39   :  { %442 = vmatprep.subr.mxu0 %v88_v6  ;;  %451 = vmatprep.subr.mxu1 %v184_v7  ;;  %v415_v22 = vld [vmem:[%s756_s6] ss:$0 sm:$0xff] }
  0x3a   :  { %443 = vmatpush3.msra.mxu0 %v88_v6  ;;  %452 = vmatpush3.msra.mxu1 %v184_v7  ;;  %p566_p10 = pnand %p565_p9, %p559_p6 }
  0x3b   :  { %445 = vmatmul.mubr.msk.f32.vlgmr.msra.gmra.mxu0 %vm99_vm0, %v87_v8  ;;  %458 = vmatprep.subr.mxu0 %v274_v9 }
  0x3c   :  { %459 = vmatpush3.msra.mxu0 %v274_v9  ;;  %453 = vmatprep.subr.mxu1 %v183_v10 }
  0x3d   :  { %460 = vmatprep.subr.mxu0 %v273_v11  ;;  %454 = vmatpush3.msra.mxu1 %v183_v10 }
  0x3e   :  { %461 = vmatpush3.msra.mxu0 %v273_v11  ;;  %455 = vmatprep.mubr.msk.f32.mxu1 %vm99_vm0, %v86_v3 }
  0x3f   :  { %462 = vmatprep.subr.mxu0 %v272_v12  ;;  %456 = vmatmul.mubr.msk.f32.vlgmr.msra.gmra.mxu1 %vm99_vm0, %v87_v8 }
  0x40   :  { %463 = vmatpush3.msra.mxu0 %v272_v12  ;;  %466 = vmatprep.mubr.msk.f32.mxu0 %vm99_vm0, %v86_v3 }
  0x41   :  { %464 = vmatprep.subr.mxu0 %v271_v13 }
  0x42   :  { %465 = vmatpush3.msra.mxu0 %v271_v13 }
  0x43   :  { %467 = vmatmul.mubr.msk.f32.vlgmr.msra.gmra.mxu0 %vm99_vm0, %v87_v8 }
  0xfb   :  { %v446_v15 = vpop.f32.mrf.mxu0 }
  0xfc   :  { %v178_v16 = vadd.f32 %v446_v15, %v409_v14 }
  0xfd   :  { %v172_v17 = vpop.f32.mrf.mxu0 }
  0xfe   :  { %182 = vst.msk [vmem:[#allocation10 + $0x8] sm:$0xff] %vm99_vm0, %v178_v16  ;;  %v173_v19 = vadd.f32 %v409_v14, %v172_v17 }
  0xff   :  { %v457_v20 = vpop.f32.mrf.mxu1 }
 0x100   :  { %181 = vst.msk [vmem:[#allocation10] sm:$0xff] %vm99_vm0, %v173_v19  ;;  %v266_v21 = vadd.f32 %v457_v20, %v412_v18 }
 0x101   :  { %v260_v23 = vpop.f32.mrf.mxu1 }
 0x102   :  { %569 = shalt.err (!%p566_p10)
}
 0x103   :  { %370 = dma.vmem_to_hbm [thread:$0]  %s365_s30, 256, %s757_s7, [#allocation4], %s630_s14, %s630_s14, %s631_s15   ;;  %270 = vst.msk [vmem:[#allocation11 + $0x8] sm:$0xff] %vm99_vm0, %v266_v21  ;;  %v261_v24 = vadd.f32 %v412_v18, %v260_v23  ;;  %v468_v25 = vpop.f32.mrf.mxu0 }
 0x104   :  { %s636_s6 = smov [#allocation13]   ;;  %v354_v26 = vadd.f32 %v468_v25, %v415_v22  ;;  %s578_s20 = scalar_lea.vmem %s377_s13, 256 }
 0x105   :  { %s388_s19 = sshll.u32 %s636_s6, 4  ;;  %269 = vst.msk [vmem:[#allocation11] sm:$0xff] %vm99_vm0, %v261_v24  ;;  %v348_v27 = vpop.f32.mrf.mxu0  ;;  %p579_p11 = scmp.ne.s32.totalorder %s377_s13, %s578_s20  ;;  %s389_s19 = int_to_ptr.vmem [resolvable:$true] %s388_s19 }
 0x106   :  { %p583_p12 = scmp.lt.s32.totalorder %s377_s13, %s377_s13  ;;  %p584_p13 = scmp.lt.s32.totalorder %s578_s20, %s578_s20 }
 0x108   :  { %p585_p0 = por %p584_p13, %p583_p12 }
 0x10a   :  { %p586_p1 = pnand %p585_p0, %p579_p11 }
 0x10c   :  { %589 = shalt.err (!%p586_p1)
}
 0x10d   :  { %382 = dma.vmem_to_hbm [thread:$0]  %s377_s13, 256, %s758_s8, [#allocation12], %s630_s14, %s630_s14, %s631_s15   ;;  %358 = vst.msk [vmem:[#allocation13 + $0x8] sm:$0xff] %vm99_vm0, %v354_v26  ;;  %v349_v28 = vadd.f32 %v415_v22, %v348_v27 }
 0x10e   :  { %s598_s22 = scalar_lea.vmem %s389_s19, 256  ;;  %p603_p3 = scmp.lt.s32.totalorder %s389_s19, %s389_s19 }
 0x10f   :  { %357 = vst.msk [vmem:[#allocation13] sm:$0xff] %vm99_vm0, %v349_v28  ;;  %p599_p2 = scmp.ne.s32.totalorder %s389_s19, %s598_s22  ;;  %p604_p4 = scmp.lt.s32.totalorder %s598_s22, %s598_s22 }
 0x111   :  { %p605_p5 = por %p604_p4, %p603_p3 }
 0x113   :  { %p606_p6 = pnand %p605_p5, %p599_p2 }
 0x115   :  { %609 = shalt.err (!%p606_p6)
}
 0x116   :  { %394 = dma.vmem_to_hbm [thread:$0]  %s389_s19, 256, %s759_s9, [#allocation12], %s630_s14, %s630_s14, %s631_s15  }
 0x117   :  { %624 = dma.done.wait [#allocation4], 256  }
 0x118   :  { %625 = vsyncadd [#allocation4], 4294967040 }
 0x119   :  { %626 = dma.done.wait [#allocation12], 512  }
 0x11a   :  { %627 = vsyncadd [#allocation12], 4294966784 }
 0x11b   :  { %404 = vsyncpa [#allocation3], 1 }
 0x11c   :  { %405 = vsyncpa [#allocation6], 1 }
 0x11d   :  { %406 = vsyncpa [#allocation9], 1 }
 0x11e   :  { %407 = vsyncpa [#allocation4], 1 }
 0x11f   :  { %408 = vsyncpa [#allocation12], 1 }

</bundles_post_ra>
